<compile_context>
chip_gen: v7x
topology: tpu7x:2x2x1
jax: 0.10.0
libtpu: 0.0.40
codegen_flags: <defaults>
</compile_context>

<pallas_src>
import functools
import math

import jax
import jax.numpy as jnp
from jax.experimental import pallas as pl
from jax.experimental.pallas import tpu as pltpu


# (planes, num_blocks, first-block stride) -- static ResNet50 structure.
_LAYER_SPEC = ((64, 3, 1), (128, 4, 2), (256, 6, 2), (512, 3, 2))


def _round_up(x, m):
    return (x + m - 1) // m * m


# ---------------------------------------------------------------------------
# Tiled MXU matmul with fused bias / ReLU / residual epilogue
# ---------------------------------------------------------------------------

def _mm_kernel(x_ref, w_ref, b_ref, o_ref, acc_ref, *, relu):
    k = pl.program_id(2)

    @pl.when(k == 0)
    def _():
        acc_ref[...] = jnp.zeros_like(acc_ref)

    acc_ref[...] += jnp.dot(x_ref[...], w_ref[...],
                            preferred_element_type=jnp.float32)

    @pl.when(k == pl.num_programs(2) - 1)
    def _():
        out = acc_ref[...] + b_ref[...]
        if relu:
            out = jnp.maximum(out, 0.0)
        o_ref[...] = out.astype(o_ref.dtype)


def _mm_res_kernel(x_ref, w_ref, b_ref, r_ref, o_ref, acc_ref, *, relu):
    k = pl.program_id(2)

    @pl.when(k == 0)
    def _():
        acc_ref[...] = jnp.zeros_like(acc_ref)

    acc_ref[...] += jnp.dot(x_ref[...], w_ref[...],
                            preferred_element_type=jnp.float32)

    @pl.when(k == pl.num_programs(2) - 1)
    def _():
        out = acc_ref[...] + b_ref[...] + r_ref[...].astype(jnp.float32)
        if relu:
            out = jnp.maximum(out, 0.0)
        o_ref[...] = out.astype(o_ref.dtype)


def _pick_tiles(M, Kp, Np):
    # M tiles
    if M <= 256:
        tm = _round_up(max(M, 1), 8)
        Mp = tm
    else:
        tm = 256
        Mp = _round_up(M, tm)
    # N tiles (Np is always a multiple of 128)
    if Np <= 512:
        tn = Np
    elif Np % 256 == 0:
        tn = 256
    else:
        tn = 128
    # K tiles: single block up to 2304, otherwise a 128-multiple dividing Kp
    if Kp <= 2304:
        tk = Kp
    else:
        tk = 128
        for d in (768, 640, 512, 384, 256):
            if Kp % d == 0:
                tk = d
                break
    return tm, Mp, tn, tk


def matmul_bias_act(x, w, b, relu, residual=None, out_dtype=jnp.bfloat16):
    """out = act(x @ w + b [+ residual]).

    x: (M, K); w: (Kp, Np) bf16, pre-padded (zero pad rows/cols); b: (1, Np) f32.
    Returns (M, Np) -- padded output channels stay exactly zero, so channel
    padding is persistent across layers and never sliced off.
    """
    M, K = x.shape
    Kp, Np = w.shape
    tm, Mp, tn, tk = _pick_tiles(M, Kp, Np)

    xp = x.astype(jnp.bfloat16)
    if (Mp - M) or (Kp - K):
        xp = jnp.pad(xp, ((0, Mp - M), (0, Kp - K)))

    in_specs = [
        pl.BlockSpec((tm, tk), lambda i, j, k: (i, k)),
        pl.BlockSpec((tk, tn), lambda i, j, k: (k, j)),
        pl.BlockSpec((1, tn), lambda i, j, k: (0, j)),
    ]
    args = [xp, w, b]
    if residual is not None:
        rp = residual.astype(jnp.bfloat16)
        if Mp - M:
            rp = jnp.pad(rp, ((0, Mp - M), (0, 0)))
        in_specs.append(pl.BlockSpec((tm, tn), lambda i, j, k: (i, j)))
        args.append(rp)
        kern = functools.partial(_mm_res_kernel, relu=relu)
    else:
        kern = functools.partial(_mm_kernel, relu=relu)

    out = pl.pallas_call(
        kern,
        out_shape=jax.ShapeDtypeStruct((Mp, Np), out_dtype),
        grid_spec=pltpu.PrefetchScalarGridSpec(
            num_scalar_prefetch=0,
            grid=(Mp // tm, Np // tn, Kp // tk),
            in_specs=in_specs,
            out_specs=pl.BlockSpec((tm, tn), lambda i, j, k: (i, j)),
            scratch_shapes=[pltpu.VMEM((tm, tn), jnp.float32)],
        ),
        compiler_params=pltpu.CompilerParams(
            dimension_semantics=("parallel", "parallel", "arbitrary")),
    )(*args)
    return out[:M] if Mp != M else out


# ---------------------------------------------------------------------------
# Maxpool 3x3 / stride 2 / pad 1  (chained VPU max over 9 window slices)
# ---------------------------------------------------------------------------

def _max9_kernel(s0, s1, s2, s3, s4, s5, s6, s7, s8, o_ref):
    r = s0[...]
    for s in (s1, s2, s3, s4, s5, s6, s7, s8):
        r = jnp.maximum(r, s[...])
    o_ref[...] = r


def maxpool_3x3_s2_p1(x):
    """PyTorch nn.MaxPool2d(kernel_size=3, stride=2, padding=1), NHWC."""
    N, H, W, C = x.shape
    k, s, p = 3, 2, 1
    Ho = (H + 2 * p - k) // s + 1
    Wo = (W + 2 * p - k) // s + 1
    xp = jnp.pad(x, ((0, 0), (p, p), (p, p), (0, 0)),
                 constant_values=-jnp.inf)
    M = N * Ho * Wo
    Cp = _round_up(C, 128)          # C is already 128 with persistent padding
    if M <= 512:
        tm = _round_up(M, 8)
        Mp = tm
    else:
        tm = 512
        Mp = _round_up(M, tm)

    slices = []
    for i in range(k):
        for j in range(k):
            sl = xp[:, i:i + s * Ho:s, j:j + s * Wo:s, :].reshape(M, C)
            if (Mp - M) or (Cp - C):
                sl = jnp.pad(sl, ((0, Mp - M), (0, Cp - C)))
            slices.append(sl)

    out = pl.pallas_call(
        _max9_kernel,
        out_shape=jax.ShapeDtypeStruct((Mp, Cp), x.dtype),
        grid_spec=pltpu.PrefetchScalarGridSpec(
            num_scalar_prefetch=0,
            grid=(Mp // tm,),
            in_specs=[pl.BlockSpec((tm, Cp), lambda i: (i, 0))] * 9,
            out_specs=pl.BlockSpec((tm, Cp), lambda i: (i, 0)),
        ),
        compiler_params=pltpu.CompilerParams(dimension_semantics=("parallel",)),
    )(*slices)
    return out[:M, :Cp].reshape(N, Ho, Wo, Cp)


# ---------------------------------------------------------------------------
# Row-wise L2 normalize (F.normalize, dim=1, eps=1e-12)
# ---------------------------------------------------------------------------

def _l2norm_kernel(x_ref, o_ref):
    x = x_ref[...]
    n = jnp.maximum(jnp.sqrt(jnp.sum(x * x, axis=-1, keepdims=True)), 1e-12)
    o_ref[...] = x / n


def l2_normalize_rows(x):
    B, E = x.shape
    Ep = _round_up(E, 128)
    if B <= 256:
        tb = _round_up(B, 8)
        Bp = tb
    else:
        tb = 256
        Bp = _round_up(B, tb)
    xp = x.astype(jnp.float32)
    if (Bp - B) or (Ep - E):
        xp = jnp.pad(xp, ((0, Bp - B), (0, Ep - E)))
    out = pl.pallas_call(
        _l2norm_kernel,
        out_shape=jax.ShapeDtypeStruct((Bp, Ep), jnp.float32),
        grid_spec=pltpu.PrefetchScalarGridSpec(
            num_scalar_prefetch=0,
            grid=(Bp // tb,),
            in_specs=[pl.BlockSpec((tb, Ep), lambda i: (i, 0))],
            out_specs=pl.BlockSpec((tb, Ep), lambda i: (i, 0)),
        ),
        compiler_params=pltpu.CompilerParams(dimension_semantics=("parallel",)),
    )(xp)
    return out[:B, :E]


# ---------------------------------------------------------------------------
# ArcMarginProduct head (tiled over classes, bf16 MXU matmul, f32 margin math)
# ---------------------------------------------------------------------------

def _arc_kernel(x_ref, w_ref, lab_ref, o_ref, *, s, cos_m, sin_m, th, mm, tn):
    j = pl.program_id(0)
    cosine = jnp.dot(x_ref[...], w_ref[...], preferred_element_type=jnp.float32)
    sine = jnp.sqrt(jnp.clip(1.0 - cosine * cosine, 0.0, 1.0))
    phi = cosine * cos_m - sine * sin_m
    phi = jnp.where(cosine > th, phi, cosine - mm)     # easy_margin=False branch
    col = jax.lax.broadcasted_iota(jnp.int32, cosine.shape, 1) + j * tn
    one_hot = col == lab_ref[...]
    o_ref[...] = jnp.where(one_hot, phi, cosine) * s


def arc_margin_product(emb, wt, labels, num_classes, s=30.0, m=0.5):
    """emb: (B, E) f32; wt: (Ep, Cp) pre-normalized/transposed/padded bf16."""
    B, E = emb.shape
    Ep, Cp = wt.shape
    xn = l2_normalize_rows(emb)                                   # (B, E) f32

    Bp = _round_up(B, 8)
    xb = jnp.pad(xn, ((0, Bp - B), (0, Ep - E))).astype(jnp.bfloat16)
    lab = jnp.pad(labels.astype(jnp.int32), (0, Bp - B),
                  constant_values=-1).reshape(Bp, 1)

    tn = 512 if Cp % 512 == 0 else (256 if Cp % 256 == 0 else 128)

    kern = functools.partial(
        _arc_kernel, s=s,
        cos_m=math.cos(m), sin_m=math.sin(m),
        th=math.cos(math.pi - m), mm=math.sin(math.pi - m) * m, tn=tn)

    out = pl.pallas_call(
        kern,
        out_shape=jax.ShapeDtypeStruct((Bp, Cp), jnp.float32),
        grid_spec=pltpu.PrefetchScalarGridSpec(
            num_scalar_prefetch=0,
            grid=(Cp // tn,),
            in_specs=[
                pl.BlockSpec((Bp, Ep), lambda j: (0, 0)),
                pl.BlockSpec((Ep, tn), lambda j: (0, j)),
                pl.BlockSpec((Bp, 1), lambda j: (0, 0)),
            ],
            out_specs=pl.BlockSpec((Bp, tn), lambda j: (0, j)),
        ),
        compiler_params=pltpu.CompilerParams(dimension_semantics=("parallel",)),
    )(xb, wt, lab)
    return out[:B, :num_classes]


# ---------------------------------------------------------------------------
# ResNet50 backbone (NHWC, bf16 activations, persistent 128-channel padding)
# ---------------------------------------------------------------------------

def im2col_nhwc(x, kh, kw, stride, padding):
    N, H, W, C = x.shape
    xp = jnp.pad(x, ((0, 0), (padding, padding), (padding, padding), (0, 0)))
    Ho = (H + 2 * padding - kh) // stride + 1
    Wo = (W + 2 * padding - kw) // stride + 1
    cols = [xp[:, i:i + stride * Ho:stride, j:j + stride * Wo:stride, :]
            for i in range(kh) for j in range(kw)]
    p = jnp.stack(cols, axis=3)                       # (N, Ho, Wo, kh*kw, C)
    return p.reshape(N * Ho * Wo, kh * kw * C), Ho, Wo


def conv_prepared(x, p, kh, kw, stride, padding, relu, residual=None):
    """NHWC conv with pre-folded/pre-padded matmul weight; bias/ReLU/residual
    fused into the matmul epilogue.  Output keeps 128-padded channels."""
    N = x.shape[0]
    w, b = p["w"], p["b"]
    Np = w.shape[1]
    if kh == 1 and kw == 1 and padding == 0:
        xs = x[:, ::stride, ::stride, :] if stride > 1 else x
        Ho, Wo = xs.shape[1], xs.shape[2]
        xm = xs.reshape(N * Ho * Wo, xs.shape[3])
    else:
        xm, Ho, Wo = im2col_nhwc(x, kh, kw, stride, padding)
    rm = None
    if residual is not None:
        rm = residual.reshape(N * Ho * Wo, Np)
    out = matmul_bias_act(xm, w, b, relu=relu, residual=rm)
    return out.reshape(N, Ho, Wo, Np)


def _bottleneck(pblk, x, stride):
    out = conv_prepared(x, pblk["conv1"], 1, 1, 1, 0, relu=True)
    out = conv_prepared(out, pblk["conv2"], 3, 3, stride, 1, relu=True)
    if "down" in pblk:
        identity = conv_prepared(x, pblk["down"], 1, 1, stride, 0, relu=False)
    else:
        identity = x
    # residual add + ReLU fused into the conv3 matmul epilogue
    return conv_prepared(out, pblk["conv3"], 1, 1, 1, 0, relu=True,
                         residual=identity)


# ---------------------------------------------------------------------------
# Raw parameter init (resnet50 + embedding Linear + ArcMargin weight)
# ---------------------------------------------------------------------------

class _KeyGen:
    def __init__(self, seed):
        self._key = jax.random.PRNGKey(seed)

    def __call__(self):
        self._key, k = jax.random.split(self._key)
        return k


def _conv_w(kg, cout, cin, ksize):
    fan_in = cin * ksize * ksize
    std = math.sqrt(2.0 / fan_in)
    return jax.random.normal(kg(), (cout, cin, ksize, ksize), jnp.float32) * std


def _bn(c):
    return dict(gamma=jnp.ones((c,), jnp.float32),
                beta=jnp.zeros((c,), jnp.float32),
                mean=jnp.zeros((c,), jnp.float32),
                var=jnp.ones((c,), jnp.float32))


def init_params(num_classes, emb_size=512, seed=0):
    kg = _KeyGen(seed)
    backbone = dict(conv1=_conv_w(kg, 64, 3, 7), bn1=_bn(64), layers=[])
    in_ch = 64
    for planes, n_blocks, stride in _LAYER_SPEC:
        layer = []
        for b in range(n_blocks):
            st = stride if b == 0 else 1
            blk = dict(
                conv1=_conv_w(kg, planes, in_ch, 1), bn1=_bn(planes),
                conv2=_conv_w(kg, planes, planes, 3), bn2=_bn(planes),
                conv3=_conv_w(kg, planes * 4, planes, 1), bn3=_bn(planes * 4))
            if st != 1 or in_ch != planes * 4:
                blk["down_conv"] = _conv_w(kg, planes * 4, in_ch, 1)
                blk["down_bn"] = _bn(planes * 4)
            layer.append(blk)
            in_ch = planes * 4
        backbone["layers"].append(layer)

    # nn.Linear(2048, emb_size) default init
    bound = 1.0 / math.sqrt(2048)
    emb_w = jax.random.uniform(kg(), (emb_size, 2048), jnp.float32, -bound, bound)
    emb_b = jax.random.uniform(kg(), (emb_size,), jnp.float32, -bound, bound)

    # ArcMarginProduct weight, xavier_uniform
    xb = math.sqrt(6.0 / (emb_size + num_classes))
    arc_w = jax.random.uniform(kg(), (num_classes, emb_size), jnp.float32, -xb, xb)

    return dict(backbone=backbone, emb_w=emb_w, emb_b=emb_b, arc_w=arc_w)


# ---------------------------------------------------------------------------
# One-time parameter preparation: BN fold, transpose, pad, bf16 cast
# ---------------------------------------------------------------------------

def _fold_conv(w, bn, in_cp, eps=1e-5):
    """Fold eval-mode BN into the conv, emit a matmul-ready (Kp, Np) bf16 weight
    and (1, Np) f32 bias; padded rows/cols are zero so padded output channels
    stay exactly zero downstream."""
    cout, cin, kh, kw = (int(d) for d in w.shape)
    scale = bn["gamma"] * jax.lax.rsqrt(bn["var"] + eps)
    w_f = w * scale[:, None, None, None]
    b_f = bn["beta"] - bn["mean"] * scale
    w_f = jnp.pad(w_f, ((0, 0), (0, in_cp - cin), (0, 0), (0, 0)))
    if kh == 1 and kw == 1:
        wm = w_f.reshape(cout, in_cp).T                         # (Cin_p, Cout)
    else:
        wm = w_f.transpose(2, 3, 1, 0).reshape(kh * kw * in_cp, cout)
    K = int(wm.shape[0])
    Kp = _round_up(K, 128)
    Np = _round_up(cout, 128)
    wm = jnp.pad(wm, ((0, Kp - K), (0, Np - cout))).astype(jnp.bfloat16)
    bm = jnp.pad(b_f, (0, Np - cout)).astype(jnp.float32).reshape(1, Np)
    return {"w": wm, "b": bm}


def prepare_params(raw, eps=1e-5):
    bk = raw["backbone"]
    prep = {"conv1": _fold_conv(bk["conv1"], bk["bn1"], 3, eps), "layers": []}
    in_cp = 128                                   # conv1 output, padded channels
    for layer in bk["layers"]:
        players = []
        for blk in layer:
            planes = int(blk["conv1"].shape[0])
            mid_cp = _round_up(planes, 128)
            pblk = {
                "conv1": _fold_conv(blk["conv1"], blk["bn1"], in_cp, eps),
                "conv2": _fold_conv(blk["conv2"], blk["bn2"], mid_cp, eps),
                "conv3": _fold_conv(blk["conv3"], blk["bn3"], mid_cp, eps),
            }
            if "down_conv" in blk:
                pblk["down"] = _fold_conv(blk["down_conv"], blk["down_bn"],
                                          in_cp, eps)
            players.append(pblk)
            in_cp = _round_up(planes * 4, 128)
        prep["layers"].append(players)

    # embedding Linear (2048 -> emb_size)
    emb_w, emb_b = raw["emb_w"], raw["emb_b"]
    E = int(emb_w.shape[0])
    Ep = _round_up(E, 128)
    prep["emb"] = {
        "w": jnp.pad(emb_w.T, ((0, 0), (0, Ep - E))).astype(jnp.bfloat16),
        "b": jnp.pad(emb_b, (0, Ep - E)).astype(jnp.float32).reshape(1, Ep),
    }

    # ArcMargin weight: row-normalize once (Pallas), transpose to (E, C), pad.
    arc_w = raw["arc_w"]
    C = int(arc_w.shape[0])
    Cp = _round_up(C, 128)
    wn = l2_normalize_rows(arc_w)                               # (C, E) f32
    prep["arc_wt"] = jnp.pad(wn.T, ((0, Ep - E), (0, Cp - C))).astype(jnp.bfloat16)
    return prep


# ---------------------------------------------------------------------------
# Forward pass (matches ArcFaceResNet50.forward)
# ---------------------------------------------------------------------------

def _embed(prep, x_nchw):
    x = jnp.transpose(x_nchw, (0, 2, 3, 1)).astype(jnp.bfloat16)   # NHWC bf16
    h = conv_prepared(x, prep["conv1"], 7, 7, 2, 3, relu=True)
    h = maxpool_3x3_s2_p1(h)
    for (planes, n_blocks, layer_stride), layer in zip(_LAYER_SPEC, prep["layers"]):
        for b, pblk in enumerate(layer):
            h = _bottleneck(pblk, h, layer_stride if b == 0 else 1)
    feat = jnp.mean(h.astype(jnp.float32), axis=(1, 2))   # adaptive avgpool (1,1)
    emb = matmul_bias_act(feat, prep["emb"]["w"], prep["emb"]["b"],
                          relu=False, out_dtype=jnp.float32)
    return emb


def arcface_forward(prep, x, labels=None, *, num_classes=None, s=30.0, m=0.5):
    """Training head (labels given) -> arc-margin logits; eval -> F.normalize(emb)."""
    emb = _embed(prep, x)
    if labels is not None:
        return arc_margin_product(emb, prep["arc_wt"], labels, num_classes,
                                  s=s, m=m)
    return l2_normalize_rows(emb)


if __name__ == "__main__":
    num_classes = 16
    raw_params = init_params(num_classes=num_classes, emb_size=512, seed=0)
    prep = prepare_params(raw_params)   # one-time BN fold / transpose / pad / cast

    key = jax.random.PRNGKey(0)
    kx, kl = jax.random.split(key)
    x = jax.random.normal(kx, (2, 3, 32, 32), jnp.float32)
    labels = jax.random.randint(kl, (2,), 0, num_classes)

    @jax.jit
    def demo(pp, xx, ll):
        emb = _embed(pp, xx)
        logits = arc_margin_product(emb, pp["arc_wt"], ll, num_classes,
                                    s=30.0, m=0.5)
        emb_norm = l2_normalize_rows(emb)
        return logits, emb_norm

    logits, emb_norm = demo(prep, x, labels)
    jax.block_until_ready((logits, emb_norm))

    assert logits.shape == (2, num_classes)
    assert emb_norm.shape == (2, 512)
    assert bool(jnp.all(jnp.isfinite(logits))) and bool(jnp.all(jnp.isfinite(emb_norm)))
    print("KERNEL_OK")
</pallas_src>

<mosaic_0001>
module attributes {stable_mosaic.version = 11 : i64} {
  func.func @_l2norm_kernel(%arg0: i32, %arg1: memref<16x512xf32, #tpu.memory_space<vmem>>, %arg2: memref<16x512xf32, #tpu.memory_space<vmem>>) attributes {dimension_semantics = [#tpu.dimension_semantics<parallel>], iteration_bounds = array<i64: 1>, scalar_prefetch = 0 : i64, scratch_operands = 0 : i64, tpu.core_type = #tpu.core_type<tc>, window_params = [{transform_indices = @transform_0, window_bounds = array<i64: 16, 512>}, {transform_indices = @transform_1, window_bounds = array<i64: 16, 512>}]} {
    %c0 = arith.constant 0 : index
    %c0_0 = arith.constant 0 : index
    %0 = vector.load %arg1[%c0, %c0_0] : memref<16x512xf32, #tpu.memory_space<vmem>>, vector<16x512xf32>
    %1 = arith.mulf %0, %0 : vector<16x512xf32>
    %cst = arith.constant dense<0.000000e+00> : vector<16xf32>
    %2 = vector.multi_reduction <add>, %1, %cst [1] : vector<16x512xf32> to vector<16xf32>
    %3 = vector.shape_cast %2 : vector<16xf32> to vector<16x1xf32>
    %4 = math.sqrt %3 : vector<16x1xf32>
    %cst_1 = arith.constant 9.99999996E-13 : f32
    %5 = vector.broadcast %cst_1 : f32 to vector<16x1xf32>
    %6 = arith.maximumf %4, %5 : vector<16x1xf32>
    %7 = vector.broadcast %6 : vector<16x1xf32> to vector<16x512xf32>
    %8 = arith.divf %0, %7 : vector<16x512xf32>
    %c0_2 = arith.constant 0 : index
    %c0_3 = arith.constant 0 : index
    %9 = vector.load %arg2[%c0_2, %c0_3] : memref<16x512xf32, #tpu.memory_space<vmem>>, vector<16x512xf32>
    tpu.vector_store %arg2[%c0_2, %c0_3], %8 {strides = array<i32>} : memref<16x512xf32, #tpu.memory_space<vmem>>, vector<16x512xf32>,
    return
  }
  func.func @transform_0(%arg0: i32) -> (i32, i32) {
    %c0_i32 = arith.constant 0 : i32
    %c0_i32_0 = arith.constant 0 : i32
    return %arg0, %c0_i32 : i32, i32
  }
  func.func @transform_1(%arg0: i32) -> (i32, i32) {
    %c0_i32 = arith.constant 0 : i32
    %c0_i32_0 = arith.constant 0 : i32
    return %arg0, %c0_i32 : i32, i32
  }
}

</mosaic_0001>

<bundles_post_ra>
// kernel: tpu_custom_call.1
= control target key start
LH: loop header
LB: loop body
LE: loop exit
PB: predicated region body
PF: predicated region fallthrough
CT: control target
= control target key end

     0   :  { %6 = vsyncpa [#allocation3], 0  ;;  %s204_s0 = inlined_call_operand.hbm [shape: f32[16,512], index: 0, kind: input, shape index: {}]   ;;  %s205_s1 = inlined_call_operand.hbm [shape: f32[16,512], index: 1, kind: output, shape index: {}]  }
   0x1   :  { %7 = vsyncpa [#allocation4], 0  ;;  %s160_s6 = smov [#allocation2]   ;;  %s112_s10 = scalar_lea.hbm %s204_s0, 1024 }
   0x2   :  { %s13_s7 = sshll.u32 %s160_s6, 4  ;;  %p113_p0 = scmp.ne.s32.totalorder %s204_s0, %s112_s10  ;;  %s14_s7 = int_to_ptr.vmem [resolvable:$true] %s13_s7 }
   0x3   :  { %p116_p1 = scmp.lt.u32.totalorder %s112_s10, %s204_s0 }
   0x5   :  { %p118_p2 = pnand %p116_p1, %p113_p0 }
   0x7   :  { %121 = shalt.err (!%p118_p2)
}
   0x8   :  { %s122_s15 = scalar_lea.vmem %s14_s7, 1024  ;;  %p127_p4 = scmp.lt.s32.totalorder %s14_s7, %s14_s7 }
   0x9   :  { %p123_p3 = scmp.ne.s32.totalorder %s14_s7, %s122_s15  ;;  %p128_p5 = scmp.lt.s32.totalorder %s122_s15, %s122_s15 }
   0xb   :  { %p129_p6 = por %p128_p5, %p127_p4 }
   0xd   :  { %p130_p7 = pnand %p129_p6, %p123_p3 }
   0xf   :  { %133 = shalt.err (!%p130_p7)
}
  0x10   :  { %s161_s16 = smov 512   ;;  %s162_s17 = smov 32  }
  0x11   :  { %19 = dma.hbm_to_vmem [thread:$0]  %s204_s0, 1024, %s14_s7, [#allocation3], %s161_s16, %s161_s16, %s162_s17  }
  0x12   :  { %156 = dma.done.wait [#allocation3], 1024  }
  0x13   :  { %157 = vsyncadd [#allocation3], 4294966272  ;;  %v23_v0 = vld [vmem:[#allocation2] sm:$0xff]  ;;  %v24_v1 = vld [vmem:[#allocation2 + $0x8] sm:$0xff]  ;;  %s163_s0 = smov [#allocation5]  }
  0x14   :  { %v25_v2 = vld [vmem:[#allocation2 + $0x10] sm:$0xff]  ;;  %v26_v3 = vld [vmem:[#allocation2 + $0x18] sm:$0xff]  ;;  %v31_v4 = vmul.f32 %v23_v0, %v23_v0  ;;  %v32_v5 = vmul.f32 %v24_v1, %v24_v1  ;;  %v27_v7 = vld [vmem:[#allocation2 + $0x20] sm:$0xff]  ;;  %s88_s20 = sshll.u32 %s163_s0, 4  ;;  %s89_s20 = int_to_ptr.vmem [resolvable:$true] %s88_s20 }
  0x15   :  { %v33_v6 = vmul.f32 %v25_v2, %v25_v2  ;;  %v28_v8 = vld [vmem:[#allocation2 + $0x28] sm:$0xff]  ;;  %v29_v9 = vld [vmem:[#allocation2 + $0x30] sm:$0xff]  ;;  %v30_v10 = vld [vmem:[#allocation2 + $0x38] sm:$0xff]  ;;  %v35_v11 = vmul.f32 %v27_v7, %v27_v7  ;;  %v34_v13 = vmul.f32 %v26_v3, %v26_v3  ;;  %s134_s21 = scalar_lea.vmem %s89_s20, 1024  ;;  %p139_p9 = scmp.lt.s32.totalorder %s89_s20, %s89_s20 }
  0x16   :  { %v36_v12 = vmul.f32 %v28_v8, %v28_v8  ;;  %v39_v14 = vadd.f32 %v32_v5, %v31_v4  ;;  %v37_v15 = vmul.f32 %v29_v9, %v29_v9  ;;  %v38_v18 = vmul.f32 %v30_v10, %v30_v10  ;;  %p135_p8 = scmp.ne.s32.totalorder %s89_s20, %s134_s21  ;;  %p140_p10 = scmp.lt.s32.totalorder %s134_s21, %s134_s21 }
  0x18   :  { %v44_v16 = vadd.f32 %v36_v12, %v35_v11  ;;  %v40_v17 = vadd.f32 %v39_v14, %v33_v6  ;;  %p141_p11 = por %p140_p10, %p139_p9 }
  0x1a   :  { %v45_v19 = vadd.f32 %v44_v16, %v37_v15  ;;  %v41_v20 = vadd.f32 %v40_v17, %v34_v13  ;;  %p142_p12 = pnand %p141_p11, %p135_p8 }
  0x1c   :  { %42 = vadd.xlane.f32.xlu0 %v41_v20  ;;  %v46_v21 = vadd.f32 %v45_v19, %v38_v18 }
  0x20   :  { %47 = vadd.xlane.f32.xlu0 %v46_v21 }
  0xa9   :  { %v43_v22 = vpop.xlane.xlu0 %42 }
  0xaa   :  { %104 = vrsqrt.f32 %v43_v22  ;;  %vm51_vm0 = vcmp.eq.f32.partialorder %v43_v22, inf  ;;  %v54_v26 = vand.u32 2147483648, %v43_v22  ;;  %vm53_vm1 = vcmp.eq.f32.partialorder %v43_v22, 0.0 }
  0xad   :  { %v48_v23 = vpop.xlane.xlu0 %47 }
  0xae   :  { %106 = vrsqrt.f32 %v48_v23  ;;  %vm58_vm2 = vcmp.eq.f32.partialorder %v48_v23, inf  ;;  %v61_v32 = vand.u32 2147483648, %v48_v23  ;;  %vm60_vm3 = vcmp.eq.f32.partialorder %v48_v23, 0.0 }
  0xb4   :  { %v105_v24 = vpop.eup %104 }
  0xb5   :  { %v50_v25 = vmul.f32 %v105_v24, %v43_v22 }
  0xb7   :  { %v52_v27 = vsel %vm51_vm0, %v43_v22, %v50_v25 }
  0xb8   :  { %v107_v28 = vpop.eup %106  ;;  %v55_v29 = vsel %vm53_vm1, %v54_v26, %v52_v27 }
  0xb9   :  { %v63_v30 = vmax.f32 %v55_v29, 1e-12  ;;  %v57_v31 = vmul.f32 %v107_v28, %v48_v23 }
  0xbb   :  { %108 = vrcp.f32 %v63_v30  ;;  %v59_v33 = vsel %vm58_vm2, %v48_v23, %v57_v31 }
  0xbc   :  { %v62_v34 = vsel %vm60_vm3, %v61_v32, %v59_v33 }
  0xbd   :  { %v64_v35 = vmax.f32 %v62_v34, 1e-12 }
  0xbf   :  { %110 = vrcp.f32 %v64_v35 }
  0xc5   :  { %v109_v36 = vpop.eup %108 }
  0xc6   :  { %v66_v37 = vmul.f32 %v109_v36, %v23_v0  ;;  %v67_v38 = vmul.f32 %v109_v36, %v24_v1  ;;  %v68_v39 = vmul.f32 %v109_v36, %v25_v2  ;;  %v69_v40 = vmul.f32 %v109_v36, %v26_v3 }
  0xc8   :  { %75 = vst [vmem:[#allocation5] sm:$0xff] %v66_v37  ;;  %76 = vst [vmem:[#allocation5 + $0x8] sm:$0xff] %v67_v38 }
  0xc9   :  { %77 = vst [vmem:[#allocation5 + $0x10] sm:$0xff] %v68_v39  ;;  %78 = vst [vmem:[#allocation5 + $0x18] sm:$0xff] %v69_v40  ;;  %v111_v41 = vpop.eup %110 }
  0xca   :  { %v71_v42 = vmul.f32 %v111_v41, %v27_v7  ;;  %v72_v43 = vmul.f32 %v111_v41, %v28_v8  ;;  %v73_v44 = vmul.f32 %v111_v41, %v29_v9  ;;  %v74_v45 = vmul.f32 %v111_v41, %v30_v10 }
  0xcc   :  { %79 = vst [vmem:[#allocation5 + $0x20] sm:$0xff] %v71_v42  ;;  %80 = vst [vmem:[#allocation5 + $0x28] sm:$0xff] %v72_v43 }
  0xcd   :  { %81 = vst [vmem:[#allocation5 + $0x30] sm:$0xff] %v73_v44  ;;  %82 = vst [vmem:[#allocation5 + $0x38] sm:$0xff] %v74_v45 }
  0xce   :  { %145 = shalt.err (!%p142_p12)
}
  0xcf   :  { %s146_s24 = scalar_lea.hbm %s205_s1, 1024 }
  0xd0   :  { %p147_p13 = scmp.ne.s32.totalorder %s205_s1, %s146_s24  ;;  %p150_p0 = scmp.lt.u32.totalorder %s146_s24, %s205_s1 }
  0xd2   :  { %p152_p1 = pnand %p150_p0, %p147_p13 }
  0xd4   :  { %155 = shalt.err (!%p152_p1)
}
  0xd5   :  { %94 = dma.vmem_to_hbm [thread:$0]  %s89_s20, 1024, %s205_s1, [#allocation4], %s161_s16, %s161_s16, %s162_s17  }
  0xd6   :  { %158 = dma.done.wait [#allocation4], 1024  }
  0xd7   :  { %159 = vsyncadd [#allocation4], 4294966272 }
  0xd8   :  { %98 = vsyncpa [#allocation3], 1 }
  0xd9   :  { %99 = vsyncpa [#allocation4], 1 }

</bundles_post_ra>
